<compile_context>
chip_gen: v7x
topology: tpu7x:2x2x1
jax: 0.10.0
libtpu: 0.0.40
codegen_flags: <defaults>
</compile_context>

<pallas_src>
import jax
import jax.numpy as jnp
from jax import lax
from jax.experimental import pallas as pl
from jax.experimental.pallas import tpu as pltpu


def _round_up(a, m):
    return (a + m - 1) // m * m


def _make_kernel(B, TB, n_blocks, needs_mask):
    def kernel(xc_ref, xr_ref, yc_ref, yr_ref,
               xsqc_ref, xsqr_ref, ysqc_ref, ysqr_ref,
               sx_ref, sy_ref, sp_ref):
        jj = pl.program_id(0)          # column-block index (parallel)
        ii = pl.program_id(1)          # row-block index (reduction)

        @pl.when(ii == 0)
        def _init():
            sx_ref[...] = jnp.zeros_like(sx_ref)
            sy_ref[...] = jnp.zeros_like(sy_ref)
            sp_ref[...] = jnp.zeros_like(sp_ref)

        def dist_tile(row_blk, col_blk, sq_row, sq_col):
            # ||a_r - a_c||^2 = ||a_r||^2 + ||a_c||^2 - 2 <a_r, a_c>
            # Gram on the MXU in the input dtype, f32 accumulate; contracted-RHS
            # dot_general avoids materializing a transpose.  Norms are precomputed.
            gram = lax.dot_general(
                row_blk, col_blk,
                dimension_numbers=(((1,), (1,)), ((), ())),
                preferred_element_type=jnp.float32)              # (TB, TB)
            d2 = jnp.maximum(sq_row + sq_col - 2.0 * gram, 0.0)
            # sqrt via the EUP rsqrt slot; the tiny bias keeps d == 0 where d2 == 0.
            return d2 * lax.rsqrt(d2 + 1e-30)

        dx = dist_tile(xr_ref[...], xc_ref[...], xsqr_ref[0], xsqc_ref[0])
        dy = dist_tile(yr_ref[...], yc_ref[...], ysqr_ref[0], ysqc_ref[0])

        def accumulate(dx_t, dy_t, col_scale=None):
            # Lane-dense (1, TB) partial column sums; colsum == rowsum (symmetry).
            csx = jnp.sum(dx_t, axis=0, keepdims=True)
            csy = jnp.sum(dy_t, axis=0, keepdims=True)
            csp = jnp.sum(dx_t * dy_t, axis=0, keepdims=True)
            if col_scale is not None:
                csx = csx * col_scale
                csy = csy * col_scale
                csp = csp * col_scale
            sx_ref[...] += csx[None]
            sy_ref[...] += csy[None]
            sp_ref[...] += csp[None]

        if needs_mask:
            last = n_blocks - 1
            is_edge = (ii == last) | (jj == last)

            @pl.when(is_edge)
            def _edge():
                # Separable masks, only on edge tiles: (TB,1) row mask multiplies
                # the tiles; (1,TB) column mask multiplies the (1,TB) partial sums.
                row_ids = ii * TB + lax.broadcasted_iota(jnp.int32, (TB, 1), 0)
                col_ids = jj * TB + lax.broadcasted_iota(jnp.int32, (1, TB), 1)
                rmask = (row_ids < B).astype(jnp.float32)
                cmask = (col_ids < B).astype(jnp.float32)
                accumulate(dx * rmask, dy * rmask, col_scale=cmask)

            @pl.when(jnp.logical_not(is_edge))
            def _interior():
                accumulate(dx, dy)
        else:
            accumulate(dx, dy)

    return kernel


def _vmem_capacity_bytes():
    try:
        info = pltpu.get_tpu_info()
        return int(getattr(info, "vmem_capacity_bytes", 64 * 1024 * 1024))
    except Exception:
        return 64 * 1024 * 1024   # conservative (v7x per-TC) fallback


def _plan(B, Dx, Dy, itemsize, max_tile):
    """Pick the tile size and VMEM limit from the actual device VMEM budget."""
    cap = _vmem_capacity_bytes()
    budget = max(cap - 8 * 1024 * 1024, 16 * 1024 * 1024)   # leave ~8 MiB headroom

    def est(tb):
        io = 2 * 2 * tb * (Dx + Dy) * itemsize   # double-buffered row + col blocks
        norms = 4 * 2 * 2 * tb * 4               # tiny norm blocks (double-buffered)
        tiles = 10 * tb * tb * 4                 # dx/dy/gram/product f32 temporaries
        accs = 3 * 2 * tb * 4                    # lane-dense accumulator blocks
        return io + norms + tiles + accs + 2 * 1024 * 1024

    full = _round_up(B, 8)                       # single-tile option
    if full <= max_tile and est(full) <= budget:
        tb = full
    else:
        fitting = [t for t in (512, 256, 128) if t <= max_tile and est(t) <= budget]
        if fitting:
            tb = fitting[-1]                     # smallest fitting => least padding
            for t in fitting:                    # prefer biggest tile w/ modest padding
                if _round_up(B, t) <= 1.3 * full:
                    tb = t
                    break
        else:
            # Huge feature dim: fall back to the smallest MXU-friendly tile.
            # TODO(synk): add feature-dim (K) blocking for D so large that one
            # (128, D) block pair does not fit VMEM.
            tb = max(8, min(128, _round_up(min(full, max_tile), 8)))
    vmem_limit = int(min(budget, max(est(tb), 32 * 1024 * 1024)))
    return tb, vmem_limit


def dcov2(x, y, *, tile=512):
    """JAX/Pallas equivalent of dCov2.forward(x, y)."""
    if x.ndim == 3:
        x = x.reshape(x.shape[0], -1)            # same as torch .view(B, -1)
    if y.ndim == 3:
        y = y.reshape(y.shape[0], -1)

    B, Dx = x.shape
    Dy = y.shape[1]
    assert y.shape[0] == B

    itemsize = max(jnp.dtype(x.dtype).itemsize, jnp.dtype(y.dtype).itemsize)
    TB, vmem_limit = _plan(B, Dx, Dy, itemsize, tile)

    B_pad = _round_up(B, TB)
    needs_mask = B_pad != B
    if needs_mask:
        x = jnp.pad(x, ((0, B_pad - B), (0, 0)))
        y = jnp.pad(y, ((0, B_pad - B), (0, 0)))
    n = B_pad // TB

    # One O(B*D) pass for the squared norms, reused by every grid step.
    xsq = jnp.sum(jnp.square(x.astype(jnp.float32)), axis=1)   # (B_pad,)
    ysq = jnp.sum(jnp.square(y.astype(jnp.float32)), axis=1)
    xsq_col = xsq.reshape(n, 1, TB)
    xsq_row = xsq.reshape(n, TB, 1)
    ysq_col = ysq.reshape(n, 1, TB)
    ysq_row = ysq.reshape(n, TB, 1)

    kernel = _make_kernel(B, TB, n, needs_mask)

    grid_spec = pltpu.PrefetchScalarGridSpec(
        num_scalar_prefetch=0,
        grid=(n, n),                                            # (jj, ii)
        in_specs=[
            pl.BlockSpec((TB, Dx), lambda jj, ii: (jj, 0)),     # x column block
            pl.BlockSpec((TB, Dx), lambda jj, ii: (ii, 0)),     # x row block
            pl.BlockSpec((TB, Dy), lambda jj, ii: (jj, 0)),     # y column block
            pl.BlockSpec((TB, Dy), lambda jj, ii: (ii, 0)),     # y row block
            pl.BlockSpec((1, 1, TB), lambda jj, ii: (jj, 0, 0)),  # ||x||^2 (cols)
            pl.BlockSpec((1, TB, 1), lambda jj, ii: (ii, 0, 0)),  # ||x||^2 (rows)
            pl.BlockSpec((1, 1, TB), lambda jj, ii: (jj, 0, 0)),  # ||y||^2 (cols)
            pl.BlockSpec((1, TB, 1), lambda jj, ii: (ii, 0, 0)),  # ||y||^2 (rows)
        ],
        out_specs=[
            pl.BlockSpec((1, 1, TB), lambda jj, ii: (jj, 0, 0)),
            pl.BlockSpec((1, 1, TB), lambda jj, ii: (jj, 0, 0)),
            pl.BlockSpec((1, 1, TB), lambda jj, ii: (jj, 0, 0)),
        ],
    )

    sx, sy, sp = pl.pallas_call(
        kernel,
        out_shape=(
            jax.ShapeDtypeStruct((n, 1, TB), jnp.float32),
            jax.ShapeDtypeStruct((n, 1, TB), jnp.float32),
            jax.ShapeDtypeStruct((n, 1, TB), jnp.float32),
        ),
        grid_spec=grid_spec,
        compiler_params=pltpu.CompilerParams(
            dimension_semantics=("parallel", "arbitrary"),
            vmem_limit_bytes=vmem_limit,
        ),
    )(x, x, y, y, xsq_col, xsq_row, ysq_col, ysq_row)

    # Tiny O(B) combine (padded columns are exactly zero).
    sx = sx.reshape(-1)
    sy = sy.reshape(-1)
    sp = sp.reshape(-1)
    Bf = jnp.float32(B)
    s_prod = jnp.sum(sp)          # sum(dx * dy)
    p_rr = jnp.sum(sx * sy)       # <rowsum_dx, rowsum_dy>
    return s_prod / Bf**2 - 2.0 * p_rr / Bf**3 + jnp.sum(sx) * jnp.sum(sy) / Bf**4


def _dcov2_ref(x, y):
    # Pure-JAX mirror of the PyTorch forward (dense double-centering).
    if x.ndim == 3:
        x = x.reshape(x.shape[0], -1)
    dx = jnp.sqrt(jnp.sum((x[None, :, :] - x[:, None, :]) ** 2, axis=2))
    dy = jnp.sqrt(jnp.sum((y[None, :, :] - y[:, None, :]) ** 2, axis=2))
    cx = dx - dx.mean(1, keepdims=True) - dx.mean(0, keepdims=True) + dx.mean()
    cy = dy - dy.mean(1, keepdims=True) - dy.mean(0, keepdims=True) + dy.mean()
    return (cx * cy).mean()


if __name__ == "__main__":
    key = jax.random.PRNGKey(0)
    k1, k2, k3, k4, k5, k6 = jax.random.split(key, 6)

    # 1) Small shapes matching the module: x is 3D (B, S, D) -> flattened, y is 2D.
    x = jax.random.normal(k1, (8, 4, 8), dtype=jnp.float32)
    y = jax.random.normal(k2, (8, 16), dtype=jnp.float32)
    v = dcov2(x, y)
    jax.block_until_ready(v)
    assert jnp.allclose(v, _dcov2_ref(x, y), rtol=1e-3, atol=1e-3)

    # 2) Multi-tile grid with edge-tile masking (B not a multiple of the tile).
    x2 = jax.random.normal(k3, (300, 48), dtype=jnp.float32)
    y2 = jax.random.normal(k4, (300, 32), dtype=jnp.float32)
    v2 = dcov2(x2, y2, tile=128)
    jax.block_until_ready(v2)
    assert jnp.allclose(v2, _dcov2_ref(x2, y2), rtol=1e-2, atol=3e-3)

    # 3) Multi-tile grid, no masking (B a multiple of the tile) -> interior fast path.
    x3 = jax.random.normal(k5, (256, 32), dtype=jnp.float32)
    y3 = jax.random.normal(k6, (256, 24), dtype=jnp.float32)
    v3 = dcov2(x3, y3, tile=128)
    jax.block_until_ready(v3)
    assert jnp.allclose(v3, _dcov2_ref(x3, y3), rtol=1e-2, atol=3e-3)

    print("KERNEL_OK")
</pallas_src>

<mosaic_0001>
module attributes {stable_mosaic.version = 11 : i64} {
  func.func @kernel(%arg0: i32, %arg1: i32, %arg2: memref<8x32xf32, #tpu.memory_space<vmem>>, %arg3: memref<8x32xf32, #tpu.memory_space<vmem>>, %arg4: memref<8x16xf32, #tpu.memory_space<vmem>>, %arg5: memref<8x16xf32, #tpu.memory_space<vmem>>, %arg6: memref<1x1x8xf32, #tpu.memory_space<vmem>>, %arg7: memref<1x8x1xf32, #tpu.memory_space<vmem>>, %arg8: memref<1x1x8xf32, #tpu.memory_space<vmem>>, %arg9: memref<1x8x1xf32, #tpu.memory_space<vmem>>, %arg10: memref<1x1x8xf32, #tpu.memory_space<vmem>>, %arg11: memref<1x1x8xf32, #tpu.memory_space<vmem>>, %arg12: memref<1x1x8xf32, #tpu.memory_space<vmem>>) attributes {dimension_semantics = [#tpu.dimension_semantics<parallel>, #tpu.dimension_semantics<arbitrary>], iteration_bounds = array<i64: 1, 1>, scalar_prefetch = 0 : i64, scratch_operands = 0 : i64, tpu.core_type = #tpu.core_type<tc>, window_params = [{transform_indices = @transform_0, window_bounds = array<i64: 8, 32>}, {transform_indices = @transform_1, window_bounds = array<i64: 8, 32>}, {transform_indices = @transform_2, window_bounds = array<i64: 8, 16>}, {transform_indices = @transform_3, window_bounds = array<i64: 8, 16>}, {transform_indices = @transform_4, window_bounds = array<i64: 1, 1, 8>}, {transform_indices = @transform_5, window_bounds = array<i64: 1, 8, 1>}, {transform_indices = @transform_6, window_bounds = array<i64: 1, 1, 8>}, {transform_indices = @transform_7, window_bounds = array<i64: 1, 8, 1>}, {transform_indices = @transform_8, window_bounds = array<i64: 1, 1, 8>}, {transform_indices = @transform_9, window_bounds = array<i64: 1, 1, 8>}, {transform_indices = @transform_10, window_bounds = array<i64: 1, 1, 8>}]} {
    %c0_i32 = arith.constant 0 : i32
    %0 = arith.cmpi eq, %arg1, %c0_i32 : i32
    %1 = arith.extui %0 : i1 to i32
    %c0_i32_0 = arith.constant 0 : i32
    %2 = arith.cmpi ne, %1, %c0_i32_0 : i32
    scf.if %2 {
      %cst_48 = arith.constant 0.000000e+00 : f32
      %60 = vector.broadcast %cst_48 : f32 to vector<1x1x8xf32>
      %c0_49 = arith.constant 0 : index
      %c0_50 = arith.constant 0 : index
      %c0_51 = arith.constant 0 : index
      %61 = vector.load %arg10[%c0_49, %c0_50, %c0_51] : memref<1x1x8xf32, #tpu.memory_space<vmem>>, vector<1x1x8xf32>
      tpu.vector_store %arg10[%c0_49, %c0_50, %c0_51], %60 {strides = array<i32>} : memref<1x1x8xf32, #tpu.memory_space<vmem>>, vector<1x1x8xf32>,
      %cst_52 = arith.constant 0.000000e+00 : f32
      %62 = vector.broadcast %cst_52 : f32 to vector<1x1x8xf32>
      %c0_53 = arith.constant 0 : index
      %c0_54 = arith.constant 0 : index
      %c0_55 = arith.constant 0 : index
      %63 = vector.load %arg11[%c0_53, %c0_54, %c0_55] : memref<1x1x8xf32, #tpu.memory_space<vmem>>, vector<1x1x8xf32>
      tpu.vector_store %arg11[%c0_53, %c0_54, %c0_55], %62 {strides = array<i32>} : memref<1x1x8xf32, #tpu.memory_space<vmem>>, vector<1x1x8xf32>,
      %cst_56 = arith.constant 0.000000e+00 : f32
      %64 = vector.broadcast %cst_56 : f32 to vector<1x1x8xf32>
      %c0_57 = arith.constant 0 : index
      %c0_58 = arith.constant 0 : index
      %c0_59 = arith.constant 0 : index
      %65 = vector.load %arg12[%c0_57, %c0_58, %c0_59] : memref<1x1x8xf32, #tpu.memory_space<vmem>>, vector<1x1x8xf32>
      tpu.vector_store %arg12[%c0_57, %c0_58, %c0_59], %64 {strides = array<i32>} : memref<1x1x8xf32, #tpu.memory_space<vmem>>, vector<1x1x8xf32>,
    } else {
    }
    %c0 = arith.constant 0 : index
    %c0_1 = arith.constant 0 : index
    %3 = vector.load %arg3[%c0, %c0_1] : memref<8x32xf32, #tpu.memory_space<vmem>>, vector<8x32xf32>
    %c0_2 = arith.constant 0 : index
    %c0_3 = arith.constant 0 : index
    %4 = vector.load %arg2[%c0_2, %c0_3] : memref<8x32xf32, #tpu.memory_space<vmem>>, vector<8x32xf32>
    %c0_4 = arith.constant 0 : index
    %c0_5 = arith.constant 0 : index
    %c0_6 = arith.constant 0 : index
    %5 = vector.load %arg7[%c0_4, %c0_5, %c0_6] : memref<1x8x1xf32, #tpu.memory_space<vmem>>, vector<1x8x1xf32>
    %6 = vector.shape_cast %5 : vector<1x8x1xf32> to vector<8x1xf32>
    %c0_7 = arith.constant 0 : index
    %c0_8 = arith.constant 0 : index
    %c0_9 = arith.constant 0 : index
    %7 = vector.load %arg6[%c0_7, %c0_8, %c0_9] : memref<1x1x8xf32, #tpu.memory_space<vmem>>, vector<1x1x8xf32>
    %8 = vector.shape_cast %7 : vector<1x1x8xf32> to vector<1x8xf32>
    %cst = arith.constant dense<0.000000e+00> : vector<8x8xf32>
    %9 = tpu.matmul %3, %4, %cst {dimension_numbers = #tpu.dot_dimension_numbers<[1], [1], [0], [0], [0, 0, 1, 0], [], []>} : vector<8x32xf32>, vector<8x32xf32>, vector<8x8xf32> -> vector<8x8xf32>
    %10 = vector.broadcast %6 : vector<8x1xf32> to vector<8x8xf32>
    %11 = vector.broadcast %8 : vector<1x8xf32> to vector<8x8xf32>
    %12 = arith.addf %10, %11 : vector<8x8xf32>
    %cst_10 = arith.constant 2.000000e+00 : f32
    %13 = vector.broadcast %cst_10 : f32 to vector<8x8xf32>
    %14 = arith.mulf %13, %9 : vector<8x8xf32>
    %15 = arith.subf %12, %14 : vector<8x8xf32>
    %cst_11 = arith.constant 0.000000e+00 : f32
    %16 = vector.broadcast %cst_11 : f32 to vector<8x8xf32>
    %17 = arith.maximumf %15, %16 : vector<8x8xf32>
    %cst_12 = arith.constant 1.000000e-30 : f32
    %18 = vector.broadcast %cst_12 : f32 to vector<8x8xf32>
    %19 = arith.addf %17, %18 : vector<8x8xf32>
    %20 = math.rsqrt %19 : vector<8x8xf32>
    %21 = arith.mulf %17, %20 : vector<8x8xf32>
    %c0_13 = arith.constant 0 : index
    %c0_14 = arith.constant 0 : index
    %22 = vector.load %arg5[%c0_13, %c0_14] : memref<8x16xf32, #tpu.memory_space<vmem>>, vector<8x16xf32>
    %c0_15 = arith.constant 0 : index
    %c0_16 = arith.constant 0 : index
    %23 = vector.load %arg4[%c0_15, %c0_16] : memref<8x16xf32, #tpu.memory_space<vmem>>, vector<8x16xf32>
    %c0_17 = arith.constant 0 : index
    %c0_18 = arith.constant 0 : index
    %c0_19 = arith.constant 0 : index
    %24 = vector.load %arg9[%c0_17, %c0_18, %c0_19] : memref<1x8x1xf32, #tpu.memory_space<vmem>>, vector<1x8x1xf32>
    %25 = vector.shape_cast %24 : vector<1x8x1xf32> to vector<8x1xf32>
    %c0_20 = arith.constant 0 : index
    %c0_21 = arith.constant 0 : index
    %c0_22 = arith.constant 0 : index
    %26 = vector.load %arg8[%c0_20, %c0_21, %c0_22] : memref<1x1x8xf32, #tpu.memory_space<vmem>>, vector<1x1x8xf32>
    %27 = vector.shape_cast %26 : vector<1x1x8xf32> to vector<1x8xf32>
    %cst_23 = arith.constant dense<0.000000e+00> : vector<8x8xf32>
    %28 = tpu.matmul %22, %23, %cst_23 {dimension_numbers = #tpu.dot_dimension_numbers<[1], [1], [0], [0], [0, 0, 1, 0], [], []>} : vector<8x16xf32>, vector<8x16xf32>, vector<8x8xf32> -> vector<8x8xf32>
    %29 = vector.broadcast %25 : vector<8x1xf32> to vector<8x8xf32>
    %30 = vector.broadcast %27 : vector<1x8xf32> to vector<8x8xf32>
    %31 = arith.addf %29, %30 : vector<8x8xf32>
    %cst_24 = arith.constant 2.000000e+00 : f32
    %32 = vector.broadcast %cst_24 : f32 to vector<8x8xf32>
    %33 = arith.mulf %32, %28 : vector<8x8xf32>
    %34 = arith.subf %31, %33 : vector<8x8xf32>
    %cst_25 = arith.constant 0.000000e+00 : f32
    %35 = vector.broadcast %cst_25 : f32 to vector<8x8xf32>
    %36 = arith.maximumf %34, %35 : vector<8x8xf32>
    %cst_26 = arith.constant 1.000000e-30 : f32
    %37 = vector.broadcast %cst_26 : f32 to vector<8x8xf32>
    %38 = arith.addf %36, %37 : vector<8x8xf32>
    %39 = math.rsqrt %38 : vector<8x8xf32>
    %40 = arith.mulf %36, %39 : vector<8x8xf32>
    %cst_27 = arith.constant dense<0.000000e+00> : vector<8xf32>
    %41 = vector.multi_reduction <add>, %21, %cst_27 [0] : vector<8x8xf32> to vector<8xf32>
    %42 = vector.shape_cast %41 : vector<8xf32> to vector<1x8xf32>
    %cst_28 = arith.constant dense<0.000000e+00> : vector<8xf32>
    %43 = vector.multi_reduction <add>, %40, %cst_28 [0] : vector<8x8xf32> to vector<8xf32>
    %44 = vector.shape_cast %43 : vector<8xf32> to vector<1x8xf32>
    %45 = arith.mulf %21, %40 : vector<8x8xf32>
    %cst_29 = arith.constant dense<0.000000e+00> : vector<8xf32>
    %46 = vector.multi_reduction <add>, %45, %cst_29 [0] : vector<8x8xf32> to vector<8xf32>
    %47 = vector.shape_cast %46 : vector<8xf32> to vector<1x8xf32>
    %c0_30 = arith.constant 0 : index
    %c0_31 = arith.constant 0 : index
    %c0_32 = arith.constant 0 : index
    %48 = vector.load %arg10[%c0_30, %c0_31, %c0_32] : memref<1x1x8xf32, #tpu.memory_space<vmem>>, vector<1x1x8xf32>
    %49 = vector.shape_cast %42 : vector<1x8xf32> to vector<1x1x8xf32>
    %50 = arith.addf %48, %49 : vector<1x1x8xf32>
    %c0_33 = arith.constant 0 : index
    %c0_34 = arith.constant 0 : index
    %c0_35 = arith.constant 0 : index
    %51 = vector.load %arg10[%c0_33, %c0_34, %c0_35] : memref<1x1x8xf32, #tpu.memory_space<vmem>>, vector<1x1x8xf32>
    tpu.vector_store %arg10[%c0_33, %c0_34, %c0_35], %50 {strides = array<i32>} : memref<1x1x8xf32, #tpu.memory_space<vmem>>, vector<1x1x8xf32>,
    %c0_36 = arith.constant 0 : index
    %c0_37 = arith.constant 0 : index
    %c0_38 = arith.constant 0 : index
    %52 = vector.load %arg11[%c0_36, %c0_37, %c0_38] : memref<1x1x8xf32, #tpu.memory_space<vmem>>, vector<1x1x8xf32>
    %53 = vector.shape_cast %44 : vector<1x8xf32> to vector<1x1x8xf32>
    %54 = arith.addf %52, %53 : vector<1x1x8xf32>
    %c0_39 = arith.constant 0 : index
    %c0_40 = arith.constant 0 : index
    %c0_41 = arith.constant 0 : index
    %55 = vector.load %arg11[%c0_39, %c0_40, %c0_41] : memref<1x1x8xf32, #tpu.memory_space<vmem>>, vector<1x1x8xf32>
    tpu.vector_store %arg11[%c0_39, %c0_40, %c0_41], %54 {strides = array<i32>} : memref<1x1x8xf32, #tpu.memory_space<vmem>>, vector<1x1x8xf32>,
    %c0_42 = arith.constant 0 : index
    %c0_43 = arith.constant 0 : index
    %c0_44 = arith.constant 0 : index
    %56 = vector.load %arg12[%c0_42, %c0_43, %c0_44] : memref<1x1x8xf32, #tpu.memory_space<vmem>>, vector<1x1x8xf32>
    %57 = vector.shape_cast %47 : vector<1x8xf32> to vector<1x1x8xf32>
    %58 = arith.addf %56, %57 : vector<1x1x8xf32>
    %c0_45 = arith.constant 0 : index
    %c0_46 = arith.constant 0 : index
    %c0_47 = arith.constant 0 : index
    %59 = vector.load %arg12[%c0_45, %c0_46, %c0_47] : memref<1x1x8xf32, #tpu.memory_space<vmem>>, vector<1x1x8xf32>
    tpu.vector_store %arg12[%c0_45, %c0_46, %c0_47], %58 {strides = array<i32>} : memref<1x1x8xf32, #tpu.memory_space<vmem>>, vector<1x1x8xf32>,
    return
  }
  func.func @transform_0(%arg0: i32, %arg1: i32) -> (i32, i32) {
    %c0_i32 = arith.constant 0 : i32
    %c0_i32_0 = arith.constant 0 : i32
    return %arg0, %c0_i32 : i32, i32
  }
  func.func @transform_1(%arg0: i32, %arg1: i32) -> (i32, i32) {
    %c0_i32 = arith.constant 0 : i32
    %c0_i32_0 = arith.constant 0 : i32
    return %arg1, %c0_i32 : i32, i32
  }
  func.func @transform_2(%arg0: i32, %arg1: i32) -> (i32, i32) {
    %c0_i32 = arith.constant 0 : i32
    %c0_i32_0 = arith.constant 0 : i32
    return %arg0, %c0_i32 : i32, i32
  }
  func.func @transform_3(%arg0: i32, %arg1: i32) -> (i32, i32) {
    %c0_i32 = arith.constant 0 : i32
    %c0_i32_0 = arith.constant 0 : i32
    return %arg1, %c0_i32 : i32, i32
  }
  func.func @transform_4(%arg0: i32, %arg1: i32) -> (i32, i32, i32) {
    %c0_i32 = arith.constant 0 : i32
    %c0_i32_0 = arith.constant 0 : i32
    %c0_i32_1 = arith.constant 0 : i32
    return %arg0, %c0_i32, %c0_i32_0 : i32, i32, i32
  }
  func.func @transform_5(%arg0: i32, %arg1: i32) -> (i32, i32, i32) {
    %c0_i32 = arith.constant 0 : i32
    %c0_i32_0 = arith.constant 0 : i32
    %c0_i32_1 = arith.constant 0 : i32
    return %arg1, %c0_i32, %c0_i32_0 : i32, i32, i32
  }
  func.func @transform_6(%arg0: i32, %arg1: i32) -> (i32, i32, i32) {
    %c0_i32 = arith.constant 0 : i32
    %c0_i32_0 = arith.constant 0 : i32
    %c0_i32_1 = arith.constant 0 : i32
    return %arg0, %c0_i32, %c0_i32_0 : i32, i32, i32
  }
  func.func @transform_7(%arg0: i32, %arg1: i32) -> (i32, i32, i32) {
    %c0_i32 = arith.constant 0 : i32
    %c0_i32_0 = arith.constant 0 : i32
    %c0_i32_1 = arith.constant 0 : i32
    return %arg1, %c0_i32, %c0_i32_0 : i32, i32, i32
  }
  func.func @transform_8(%arg0: i32, %arg1: i32) -> (i32, i32, i32) {
    %c0_i32 = arith.constant 0 : i32
    %c0_i32_0 = arith.constant 0 : i32
    %c0_i32_1 = arith.constant 0 : i32
    return %arg0, %c0_i32, %c0_i32_0 : i32, i32, i32
  }
  func.func @transform_9(%arg0: i32, %arg1: i32) -> (i32, i32, i32) {
    %c0_i32 = arith.constant 0 : i32
    %c0_i32_0 = arith.constant 0 : i32
    %c0_i32_1 = arith.constant 0 : i32
    return %arg0, %c0_i32, %c0_i32_0 : i32, i32, i32
  }
  func.func @transform_10(%arg0: i32, %arg1: i32) -> (i32, i32, i32) {
    %c0_i32 = arith.constant 0 : i32
    %c0_i32_0 = arith.constant 0 : i32
    %c0_i32_1 = arith.constant 0 : i32
    return %arg0, %c0_i32, %c0_i32_0 : i32, i32, i32
  }
}

</mosaic_0001>

<bundles_post_ra>
// kernel: tpu_custom_call.1
= control target key start
LH: loop header
LB: loop body
LE: loop exit
PB: predicated region body
PF: predicated region fallthrough
CT: control target
= control target key end

     0   :  { %16 = vsyncpa [#allocation3], 0  ;;  %s606_s0 = inlined_call_operand.vmem [shape: f32[8,32], index: 0, kind: input, shape index: {}]   ;;  %s607_s1 = inlined_call_operand.vmem [shape: f32[8,32], index: 1, kind: input, shape index: {}]   ;;  %s608_s2 = inlined_call_operand.vmem [shape: f32[8,16], index: 2, kind: input, shape index: {}]   ;;  %s609_s3 = inlined_call_operand.hbm [shape: f32[8,16], index: 3, kind: input, shape index: {}]   ;;  %s610_s4 = inlined_call_operand.vmem [shape: f32[1,1,8], index: 4, kind: input, shape index: {}]   ;;  %s611_s5 = inlined_call_operand.vmem [shape: f32[1,8,1], index: 5, kind: input, shape index: {}]   ;;  %s612_s6 = inlined_call_operand.vmem [shape: f32[1,1,8], index: 6, kind: input, shape index: {}]   ;;  %s613_s7 = inlined_call_operand.vmem [shape: f32[1,8,1], index: 7, kind: input, shape index: {}]   ;;  %s614_s8 = inlined_call_operand.hbm [shape: f32[1,1,8], index: 8, kind: output, shape index: {0}]   ;;  %s615_s9 = inlined_call_operand.hbm [shape: f32[1,1,8], index: 9, kind: output, shape index: {1}]   ;;  %s616_s10 = inlined_call_operand.hbm [shape: f32[1,1,8], index: 10, kind: output, shape index: {2}]  }
   0x1   :  { %17 = vsyncpa [#allocation4], 0 }
   0x2   :  { %18 = vsyncpa [#allocation7], 0  ;;  %s453_s13 = smov [#allocation2]   ;;  %s359_s17 = scalar_lea.hbm %s609_s3, 128 }
   0x3   :  { %s31_s14 = sshll.u32 %s453_s13, 4  ;;  %p360_p0 = scmp.ne.s32.totalorder %s609_s3, %s359_s17  ;;  %s32_s14 = int_to_ptr.vmem [resolvable:$true] %s31_s14 }
   0x4   :  { %p363_p1 = scmp.lt.u32.totalorder %s359_s17, %s609_s3 }
   0x6   :  { %p365_p2 = pnand %p363_p1, %p360_p0 }
   0x8   :  { %368 = shalt.err (!%p365_p2)
}
   0x9   :  { %s369_s22 = scalar_lea.vmem %s32_s14, 128  ;;  %p374_p4 = scmp.lt.s32.totalorder %s32_s14, %s32_s14 }
   0xa   :  { %p370_p3 = scmp.ne.s32.totalorder %s32_s14, %s369_s22  ;;  %p375_p5 = scmp.lt.s32.totalorder %s369_s22, %s369_s22 }
   0xc   :  { %p376_p6 = por %p375_p5, %p374_p4 }
   0xe   :  { %p377_p7 = pnand %p376_p6, %p370_p3 }
  0x10   :  { %380 = shalt.err (!%p377_p7)
}
  0x11   :  { %34 = dma.hbm_to_vmem [thread:$0]  %s609_s3, 128, %s32_s14, [#allocation3]  }
  0x12   :  { %447 = dma.done.wait [#allocation3], 128  }
  0x13   :  { %448 = vsyncadd [#allocation3], 4294967168  ;;  %v454_v0 = vmov 0.0   ;;  %vm455_vm0 = vmmov 0   ;;  %v456_v1 = vmov 0   ;;  %vm58_vm1 = vcmask 261120  }
  0x14   :  { %337 = vmatprep.subr.mxu0 %v454_v0  ;;  %342 = vmatprep.subr.mxu1 %v454_v0  ;;  %vm157_vm2 = vcmask 130048   ;;  %v55_v2 = vld [vmem:[%s606_s0] sm:$0xff]  ;;  %vm50_vm3 = vcmask 57344   ;;  %vm252_vm4 = vcmask 64512   ;;  %s459_s15 = smov [#allocation8]  }
  0x15   :  { %339 = vmatprep.mubr.msk.f32.mxu0 %vm455_vm0, %v454_v0  ;;  %344 = vmatprep.mubr.msk.f32.mxu1 %vm455_vm0, %v454_v0  ;;  %v154_v3 = vld [vmem:[%s608_s2] sm:$0xff]  ;;  %52 = vst.msk [vmem:[#allocation6] sm:$0x1] %vm50_vm3, %v454_v0  ;;  %51 = vst.msk [vmem:[#allocation5] sm:$0x1] %vm50_vm3, %v454_v0  ;;  %s311_s16 = sshll.u32 %s459_s15, 4  ;;  %s554_s16 = int_to_ptr.vmem [resolvable:$true] %s311_s16 }
  0x16   :  { %354 = vset.pattern.permute.xlu0 %v456_v1  ;;  %338 = vmatpush3.xpose.msk.msra.mxu0 %vm58_vm1, %v55_v2  ;;  %v54_v4 = vld [vmem:[%s607_s1] sm:$0xff]  ;;  %53 = vst.msk [vmem:[#allocation8] sm:$0x1] %vm50_vm3, %v454_v0 }
  0x17   :  { %343 = vmatpush3.xpose.msk.msra.mxu1 %vm157_vm2, %v154_v3  ;;  %v153_v5 = vld [vmem:[#allocation2] sm:$0xff] }
  0x18   :  { %v56_v6 = vld [vmem:[%s611_s5] sm:$0xff] }
  0x19   :  { %137 = vperm.xlu0 %354, %v56_v6   ;;  %v155_v7 = vld [vmem:[%s613_s7] sm:$0xff]  ;;  %340 = vmatmul.mubr.msk.f32.vlgmr.msra.gmra.mrb[0].mxu0 %vm58_vm1, %v54_v4  ;;  %s458_s7 = smov [#allocation6]  }
  0x1a   :  { %345 = vmatmul.mubr.msk.f32.vlgmr.msra.gmra.mrb[0].mxu1 %vm157_vm2, %v153_v5  ;;  %v329_v9 = vld [vmem:[%s610_s4] ss:$0 sm:$0xff]  ;;  %s457_s4 = smov [#allocation5]   ;;  %s301_s14 = sshll.u32 %s458_s7, 4  ;;  %s551_s14 = int_to_ptr.vmem [resolvable:$true] %s301_s14 }
  0x1b   :  { %v332_v10 = vld [vmem:[%s612_s6] ss:$0 sm:$0xff]  ;;  %s291_s6 = sshll.u32 %s457_s4, 4  ;;  %s292_s6 = int_to_ptr.vmem [resolvable:$true] %s291_s6 }
  0x1c   :  { %v275_v48 = vld [vmem:[#allocation5] sm:$0x1]  ;;  %v279_v49 = vld [vmem:[#allocation6] sm:$0x1]  ;;  %s381_s17 = scalar_lea.vmem %s292_s6, 16  ;;  %s385_s18 = scalar_lea.vmem %s292_s6, 32 }
  0x1d   :  { %236 = vperm.xlu0 %354, %v155_v7   ;;  %v282_v54 = vld [vmem:[#allocation8] sm:$0x1]  ;;  %p382_p8 = scmp.ne.s32.totalorder %s292_s6, %s381_s17  ;;  %p386_p9 = scmp.lt.s32.totalorder %s292_s6, %s292_s6 }
  0x1e   :  { %p387_p10 = scmp.lt.s32.totalorder %s385_s18, %s381_s17 }
  0x20   :  { %p388_p11 = por %p387_p10, %p386_p9 }
  0x22   :  { %p389_p12 = pnand %p388_p11, %p382_p8 }
  0x98   :  { %v138_v8 = vpop.permute.xlu0 %137 }
  0x99   :  { %v146_v14 = vadd.f32 %v329_v9, %v138_v8 }
  0x9c   :  { %v237_v11 = vpop.permute.xlu0 %236 }
  0x9d   :  { %v245_v15 = vadd.f32 %v332_v10, %v237_v11 }
  0xec   :  { %v131_v12 = vpop.f32.mrb[0].mxu0 }
  0xed   :  { %v230_v13 = vpop.f32.mrb[0].mxu1  ;;  %v147_v16 = vmul.f32 2.0, %v131_v12  ;;  %v341_v18 = vpop.f32.mrb[1].mxu0 }
  0xee   :  { %v246_v17 = vmul.f32 2.0, %v230_v13  ;;  %v346_v19 = vpop.f32.mrb[1].mxu1 }
  0xef   :  { %v148_v20 = vsub.f32 %v146_v14, %v147_v16 }
  0xf0   :  { %v247_v21 = vsub.f32 %v245_v15, %v246_v17 }
  0xf1   :  { %v149_v22 = vmax.f32 %v148_v20, 0.0 }
  0xf2   :  { %v248_v23 = vmax.f32 %v247_v21, 0.0 }
  0xf3   :  { %v150_v24 = vadd.f32 1e-30, %v149_v22 }
  0xf4   :  { %v249_v25 = vadd.f32 1e-30, %v248_v23 }
  0xf5   :  { %355 = vrsqrt.f32 %v150_v24 }
  0xf6   :  { %357 = vrsqrt.f32 %v249_v25 }
  0xff   :  { %v356_v26 = vpop.eup %355 }
 0x100   :  { %v358_v27 = vpop.eup %357  ;;  %v152_v28 = vmul.f32 %v356_v26, %v149_v22 }
 0x101   :  { %v251_v29 = vmul.f32 %v358_v27, %v248_v23 }
 0x102   :  { %v253_v30 = vsel %vm252_vm4, %v152_v28, 0.0 }
 0x103   :  { %v254_v31 = vrot.slane %v253_v30, 4  ;;  %v260_v32 = vsel %vm252_vm4, %v251_v29, 0.0  ;;  %v267_v33 = vmul.f32 %v251_v29, %v152_v28 }
 0x104   :  { %v261_v34 = vrot.slane %v260_v32, 4 }
 0x105   :  { %v255_v35 = vadd.f32 %v254_v31, %v253_v30  ;;  %v268_v36 = vsel %vm252_vm4, %v267_v33, 0.0 }
 0x106   :  { %v262_v37 = vadd.f32 %v261_v34, %v260_v32  ;;  %v269_v38 = vrot.slane %v268_v36, 4 }
 0x107   :  { %v256_v39 = vrot.slane %v255_v35, 2 }
 0x108   :  { %v263_v40 = vrot.slane %v262_v37, 2  ;;  %v270_v41 = vadd.f32 %v269_v38, %v268_v36 }
 0x109   :  { %v257_v42 = vadd.f32 %v256_v39, %v255_v35 }
 0x10a   :  { %v264_v43 = vadd.f32 %v263_v40, %v262_v37  ;;  %v271_v44 = vrot.slane %v270_v41, 2 }
 0x10b   :  { %v258_v45 = vrot.slane %v257_v42, 1 }
 0x10c   :  { %v265_v46 = vrot.slane %v264_v43, 1  ;;  %v272_v47 = vadd.f32 %v271_v44, %v270_v41 }
 0x10d   :  { %v259_v50 = vadd.f32 %v258_v45, %v257_v42 }
 0x10e   :  { %v273_v51 = vrot.slane %v272_v47, 1  ;;  %v266_v52 = vadd.f32 %v265_v46, %v264_v43 }
 0x10f   :  { %v276_v53 = vadd.f32 %v275_v48, %v259_v50 }
 0x110   :  { %v280_v55 = vadd.f32 %v279_v49, %v266_v52  ;;  %v274_v56 = vadd.f32 %v273_v51, %v272_v47 }
 0x111   :  { %278 = vst.msk [vmem:[#allocation5] sm:$0x1] %vm50_vm3, %v276_v53 }
 0x112   :  { %281 = vst.msk [vmem:[#allocation6] sm:$0x1] %vm50_vm3, %v280_v55 }
 0x113   :  { %392 = shalt.err (!%p389_p12)
}
 0x114   :  { %s393_s21 = scalar_lea.hbm %s614_s8, 16 }
 0x115   :  { %p394_p13 = scmp.ne.s32.totalorder %s614_s8, %s393_s21  ;;  %p397_p0 = scmp.lt.u32.totalorder %s393_s21, %s614_s8 }
 0x117   :  { %p399_p1 = pnand %p397_p0, %p394_p13 }
 0x119   :  { %402 = shalt.err (!%p399_p1)
}
 0x11a   :  { %294 = dma.vmem_to_hbm [thread:$0]  %s292_s6, 16, %s614_s8, [#allocation4]   ;;  %v283_v57 = vadd.f32 %v282_v54, %v274_v56 }
 0x11b   :  { %s403_s28 = scalar_lea.vmem %s551_s14, 16  ;;  %s407_s3 = scalar_lea.vmem %s551_s14, 32 }
 0x11c   :  { %p404_p2 = scmp.ne.s32.totalorder %s551_s14, %s403_s28  ;;  %p408_p3 = scmp.lt.s32.totalorder %s551_s14, %s551_s14 }
 0x11d   :  { %p409_p4 = scmp.lt.s32.totalorder %s407_s3, %s403_s28 }
 0x11f   :  { %p410_p5 = por %p409_p4, %p408_p3 }
 0x121   :  { %p411_p6 = pnand %p410_p5, %p404_p2 }
 0x123   :  { %414 = shalt.err (!%p411_p6)
}
 0x124   :  { %s415_s11 = scalar_lea.hbm %s615_s9, 16 }
 0x125   :  { %p416_p7 = scmp.ne.s32.totalorder %s615_s9, %s415_s11  ;;  %p419_p8 = scmp.lt.u32.totalorder %s415_s11, %s615_s9 }
 0x127   :  { %p421_p9 = pnand %p419_p8, %p416_p7 }
 0x129   :  { %424 = shalt.err (!%p421_p9)
}
 0x12a   :  { %304 = dma.vmem_to_hbm [thread:$0]  %s551_s14, 16, %s615_s9, [#allocation7]   ;;  %284 = vst.msk [vmem:[#allocation8] sm:$0x1] %vm50_vm3, %v283_v57 }
 0x12b   :  { %s425_s5 = scalar_lea.vmem %s554_s16, 16  ;;  %s429_s4 = scalar_lea.vmem %s554_s16, 32 }
 0x12c   :  { %p426_p10 = scmp.ne.s32.totalorder %s554_s16, %s425_s5  ;;  %p430_p11 = scmp.lt.s32.totalorder %s554_s16, %s554_s16 }
 0x12d   :  { %p431_p12 = scmp.lt.s32.totalorder %s429_s4, %s425_s5 }
 0x12f   :  { %p432_p13 = por %p431_p12, %p430_p11 }
 0x131   :  { %p433_p0 = pnand %p432_p13, %p426_p10 }
 0x133   :  { %436 = shalt.err (!%p433_p0)
}
 0x134   :  { %s437_s15 = scalar_lea.hbm %s616_s10, 16 }
 0x135   :  { %p438_p1 = scmp.ne.s32.totalorder %s616_s10, %s437_s15  ;;  %p441_p2 = scmp.lt.u32.totalorder %s437_s15, %s616_s10 }
 0x137   :  { %p443_p3 = pnand %p441_p2, %p438_p1 }
 0x139   :  { %446 = shalt.err (!%p443_p3)
}
 0x13a   :  { %314 = dma.vmem_to_hbm [thread:$0]  %s554_s16, 16, %s616_s10, [#allocation7]  }
 0x13b   :  { %449 = dma.done.wait [#allocation4], 16  }
 0x13c   :  { %450 = vsyncadd [#allocation4], 4294967280 }
 0x13d   :  { %451 = dma.done.wait [#allocation7], 32  }
 0x13e   :  { %452 = vsyncadd [#allocation7], 4294967264 }
 0x13f   :  { %324 = vsyncpa [#allocation3], 1 }
 0x140   :  { %325 = vsyncpa [#allocation4], 1 }
 0x141   :  { %326 = vsyncpa [#allocation7], 1 }

</bundles_post_ra>
